<compile_context>
chip_gen: v7x
topology: tpu7x:2x2x1
jax: 0.10.0
libtpu: 0.0.40
codegen_flags: <defaults>
</compile_context>

<pallas_src>
import functools

import jax
import jax.numpy as jnp
from jax.experimental import pallas as pl
from jax.experimental.pallas import tpu as pltpu


# ----------------------------------------------------------------------------
# Tile selection helpers
# ----------------------------------------------------------------------------
def _round_up(x, m):
    return (x + m - 1) // m * m


def _gemm_tiles_k_n(K, N):
    """Tile / padded sizes for the reduction (K) and output (N) dims."""
    TK = min(512, _round_up(K, 128))
    TN = min(256, _round_up(N, 128))
    Kp = _round_up(K, TK)
    Np = _round_up(N, TN)
    return TK, TN, Kp, Np


def _gemm_tiles_m(M):
    """Tile / padded sizes for the row (M) dim (16-aligned for bf16 packing)."""
    TM = min(256, _round_up(M, 16))
    Mp = _round_up(M, TM)
    return TM, Mp


# ----------------------------------------------------------------------------
# Pallas kernels: fused  out = act(A @ B + bias)
# ----------------------------------------------------------------------------
def _gemm_single_k_kernel(a_ref, b_ref, bias_ref, o_ref, *, relu):
    """Whole K fits in one tile: no accumulator scratch, direct tile write."""
    out = jnp.dot(a_ref[...], b_ref[...], preferred_element_type=jnp.float32)
    out = out + bias_ref[...]            # bias broadcast over rows (f32)
    if relu:
        out = jnp.maximum(out, 0.0)
    o_ref[...] = out.astype(o_ref.dtype)


def _gemm_multi_k_kernel(a_ref, b_ref, bias_ref, o_ref, acc_ref, *, relu):
    """K split across grid axis 2: f32 VMEM accumulator, init/finalize."""
    k = pl.program_id(2)

    @pl.when(k == 0)
    def _():
        acc_ref[...] = jnp.zeros_like(acc_ref)

    acc_ref[...] += jnp.dot(a_ref[...], b_ref[...],
                            preferred_element_type=jnp.float32)

    @pl.when(k == pl.num_programs(2) - 1)
    def _():
        out = acc_ref[...] + bias_ref[...]
        if relu:
            out = jnp.maximum(out, 0.0)
        o_ref[...] = out.astype(o_ref.dtype)


def fused_gemm_prepared(a, b_padded, bias_padded, n_true, *, relu,
                        out_dtype=jnp.bfloat16):
    """Computes act(a @ b + bias) with a tiled Pallas kernel.

    a:            (M, K) activations / im2col columns (any float dtype).
    b_padded:     (Kp, Np) bfloat16, pre-transposed + pre-padded weights.
    bias_padded:  (1, Np) float32, pre-padded bias.
    n_true:       true (un-padded) output width; returns (M, n_true) out_dtype.
    Zero padding of K/N/M does not change the matmul / bias / ReLU result.
    """
    M, K = a.shape
    TK, TN, Kp, Np = _gemm_tiles_k_n(K, n_true)
    assert b_padded.shape == (Kp, Np), (b_padded.shape, (Kp, Np))
    assert bias_padded.shape == (1, Np)
    TM, Mp = _gemm_tiles_m(M)

    a_p = jnp.pad(a.astype(jnp.bfloat16), ((0, Mp - M), (0, Kp - K)))

    k_steps = Kp // TK
    out_shape = jax.ShapeDtypeStruct((Mp, Np), out_dtype)

    if k_steps == 1:
        # Fast path: no reduction axis, no accumulator scratch.
        out_p = pl.pallas_call(
            functools.partial(_gemm_single_k_kernel, relu=relu),
            out_shape=out_shape,
            grid_spec=pltpu.PrefetchScalarGridSpec(
                num_scalar_prefetch=0,
                grid=(Mp // TM, Np // TN),
                in_specs=[
                    pl.BlockSpec((TM, Kp), lambda i, j: (i, 0)),
                    pl.BlockSpec((Kp, TN), lambda i, j: (0, j)),
                    pl.BlockSpec((1, TN), lambda i, j: (0, j)),
                ],
                out_specs=pl.BlockSpec((TM, TN), lambda i, j: (i, j)),
            ),
            compiler_params=pltpu.CompilerParams(
                dimension_semantics=("parallel", "parallel")),
        )(a_p, b_padded, bias_padded)
    else:
        out_p = pl.pallas_call(
            functools.partial(_gemm_multi_k_kernel, relu=relu),
            out_shape=out_shape,
            grid_spec=pltpu.PrefetchScalarGridSpec(
                num_scalar_prefetch=0,
                grid=(Mp // TM, Np // TN, k_steps),
                in_specs=[
                    pl.BlockSpec((TM, TK), lambda i, j, k: (i, k)),
                    pl.BlockSpec((TK, TN), lambda i, j, k: (k, j)),
                    pl.BlockSpec((1, TN), lambda i, j, k: (0, j)),
                ],
                out_specs=pl.BlockSpec((TM, TN), lambda i, j, k: (i, j)),
                scratch_shapes=[pltpu.VMEM((TM, TN), jnp.float32)],
            ),
            compiler_params=pltpu.CompilerParams(
                dimension_semantics=("parallel", "parallel", "arbitrary")),
        )(a_p, b_padded, bias_padded)

    return out_p[:M, :n_true]


# ----------------------------------------------------------------------------
# Conv2d = im2col (plain JAX glue, fused under jit) + fused Pallas GEMM
# ----------------------------------------------------------------------------
def _im2col(x_nhwc, kh, kw, stride, pad):
    x_p = jnp.pad(x_nhwc, ((0, 0), (pad, pad), (pad, pad), (0, 0)))
    n, h, w, c = x_p.shape
    ho = (h - kh) // stride + 1
    wo = (w - kw) // stride + 1
    patches = []
    for i in range(kh):
        for j in range(kw):
            patches.append(
                x_p[:, i:i + stride * ho:stride, j:j + stride * wo:stride, :]
            )
    cols = jnp.concatenate(patches, axis=-1)        # (N, Ho, Wo, KH*KW*C)
    return cols.reshape(n * ho * wo, kh * kw * c), ho, wo


# ----------------------------------------------------------------------------
# Parameter initialization (deterministic, PyTorch-like uniform init)
# ----------------------------------------------------------------------------
def _init_conv(key, cout, cin, kh, kw):
    k1, k2 = jax.random.split(key)
    fan_in = cin * kh * kw
    bound = 1.0 / jnp.sqrt(fan_in)
    w = jax.random.uniform(k1, (cout, cin, kh, kw), jnp.float32, -bound, bound)
    b = jax.random.uniform(k2, (cout,), jnp.float32, -bound, bound)
    return w, b


def _init_linear(key, out_f, in_f):
    k1, k2 = jax.random.split(key)
    bound = 1.0 / jnp.sqrt(in_f)
    w = jax.random.uniform(k1, (out_f, in_f), jnp.float32, -bound, bound)
    b = jax.random.uniform(k2, (out_f,), jnp.float32, -bound, bound)
    return w, b


def init_params(key, in_ch, in_dim, width, linear_size):
    keys = jax.random.split(key, 7)
    params = {}
    params["conv1"] = _init_conv(keys[0], 4 * width, in_ch, 3, 3)
    params["conv2"] = _init_conv(keys[1], 4 * width, 4 * width, 4, 4)
    params["conv3"] = _init_conv(keys[2], 8 * width, 4 * width, 3, 3)
    params["conv4"] = _init_conv(keys[3], 8 * width, 8 * width, 4, 4)
    flat = 8 * width * (in_dim // 4) * (in_dim // 4)
    params["fc1"] = _init_linear(keys[4], linear_size, flat)
    params["fc2"] = _init_linear(keys[5], linear_size, linear_size)
    params["fc3"] = _init_linear(keys[6], 10, linear_size)
    return params


# ----------------------------------------------------------------------------
# One-time weight preparation (transpose / pad / bf16 cast hoisted here)
# ----------------------------------------------------------------------------
def prepare_params(raw_params):
    prep = {}   # arrays (traced through jit)
    meta = {}   # static python ints (closed over, never traced)

    for name in ("conv1", "conv2", "conv3", "conv4"):
        w, b = raw_params[name]
        cout, cin, kh, kw = w.shape
        K = kh * kw * cin
        _, _, Kp, Np = _gemm_tiles_k_n(K, cout)
        # Match im2col column ordering (i, j, cin) with cin fastest.
        w_mat = jnp.transpose(w, (2, 3, 1, 0)).reshape(K, cout)
        prep[name + "_w"] = jnp.pad(w_mat.astype(jnp.bfloat16),
                                    ((0, Kp - K), (0, Np - cout)))
        prep[name + "_b"] = jnp.pad(b.astype(jnp.float32),
                                    (0, Np - cout)).reshape(1, Np)
        meta[name] = {"kh": kh, "kw": kw, "cout": cout}

    for name in ("fc1", "fc2", "fc3"):
        w, b = raw_params[name]
        out_f, in_f = w.shape
        _, _, Kp, Np = _gemm_tiles_k_n(in_f, out_f)
        # PyTorch nn.Linear: y = x @ w.T + b -> store weights as (in, out).
        prep[name + "_w"] = jnp.pad(w.T.astype(jnp.bfloat16),
                                    ((0, Kp - in_f), (0, Np - out_f)))
        prep[name + "_b"] = jnp.pad(b.astype(jnp.float32),
                                    (0, Np - out_f)).reshape(1, Np)
        meta[name] = {"out_f": out_f}

    return prep, meta


# ----------------------------------------------------------------------------
# Full forward pass (matches cnn_7layer_alt.forward)
# ----------------------------------------------------------------------------
def _forward(meta, prep, x_nchw):
    n = x_nchw.shape[0]
    x = jnp.transpose(x_nchw, (0, 2, 3, 1))  # NCHW -> NHWC

    conv_cfg = (("conv1", 1, 1), ("conv2", 2, 1), ("conv3", 1, 1), ("conv4", 2, 1))
    for name, stride, pad in conv_cfg:
        m = meta[name]
        cols, ho, wo = _im2col(x, m["kh"], m["kw"], stride, pad)
        out = fused_gemm_prepared(cols, prep[name + "_w"], prep[name + "_b"],
                                  m["cout"], relu=True, out_dtype=jnp.bfloat16)
        x = out.reshape(n, ho, wo, m["cout"])

    # Flatten exactly as PyTorch: x.view(N, -1) on an NCHW tensor.
    x = jnp.transpose(x, (0, 3, 1, 2)).reshape(n, -1)

    # fc1 / fc2 feed the next bf16 GEMM; fc3 is the final f32 logits.
    x = fused_gemm_prepared(x, prep["fc1_w"], prep["fc1_b"],
                            meta["fc1"]["out_f"], relu=True,
                            out_dtype=jnp.bfloat16)
    x = fused_gemm_prepared(x, prep["fc2_w"], prep["fc2_b"],
                            meta["fc2"]["out_f"], relu=True,
                            out_dtype=jnp.bfloat16)
    x = fused_gemm_prepared(x, prep["fc3_w"], prep["fc3_b"],
                            meta["fc3"]["out_f"], relu=False,
                            out_dtype=jnp.float32)
    return x


def make_forward(meta):
    return jax.jit(functools.partial(_forward, meta))


if __name__ == "__main__":
    # Small but consistent shapes: in_ch=4, in_dim=16 (divisible by 4),
    # width=2, linear_size=32, batch=2.
    in_ch, in_dim, width, linear_size, batch = 4, 16, 2, 32, 2

    key = jax.random.PRNGKey(0)
    pkey, xkey = jax.random.split(key)
    raw_params = init_params(pkey, in_ch, in_dim, width, linear_size)
    prep, meta = prepare_params(raw_params)
    forward = make_forward(meta)

    x = jax.random.normal(xkey, (batch, in_ch, in_dim, in_dim), jnp.float32)

    out = forward(prep, x)
    out = jax.block_until_ready(out)
    assert out.shape == (batch, 10), out.shape
    assert out.dtype == jnp.float32
    print("KERNEL_OK")
</pallas_src>

<mosaic_0001>
module attributes {stable_mosaic.version = 11 : i64} {
  func.func @_gemm_single_k_kernel(%arg0: i32, %arg1: i32, %arg2: memref<256x128xbf16, #tpu.memory_space<vmem>>, %arg3: memref<128x128xbf16, #tpu.memory_space<vmem>>, %arg4: memref<1x128xf32, #tpu.memory_space<vmem>>, %arg5: memref<256x128xbf16, #tpu.memory_space<vmem>>) attributes {dimension_semantics = [#tpu.dimension_semantics<parallel>, #tpu.dimension_semantics<parallel>], iteration_bounds = array<i64: 2, 1>, scalar_prefetch = 0 : i64, scratch_operands = 0 : i64, tpu.core_type = #tpu.core_type<tc>, window_params = [{transform_indices = @transform_0, window_bounds = array<i64: 256, 128>}, {transform_indices = @transform_1, window_bounds = array<i64: 128, 128>}, {transform_indices = @transform_2, window_bounds = array<i64: 1, 128>}, {transform_indices = @transform_3, window_bounds = array<i64: 256, 128>}]} {
    %c0 = arith.constant 0 : index
    %c0_0 = arith.constant 0 : index
    %0 = vector.load %arg2[%c0, %c0_0] : memref<256x128xbf16, #tpu.memory_space<vmem>>, vector<256x128xbf16>
    %c0_1 = arith.constant 0 : index
    %c0_2 = arith.constant 0 : index
    %1 = vector.load %arg3[%c0_1, %c0_2] : memref<128x128xbf16, #tpu.memory_space<vmem>>, vector<128x128xbf16>
    %cst = arith.constant dense<0.000000e+00> : vector<256x128xf32>
    %2 = tpu.matmul %0, %1, %cst {dimension_numbers = #tpu.dot_dimension_numbers<[1], [0], [0], [1], [0, 0, 1, 1], [], []>} : vector<256x128xbf16>, vector<128x128xbf16>, vector<256x128xf32> -> vector<256x128xf32>
    %c0_3 = arith.constant 0 : index
    %c0_4 = arith.constant 0 : index
    %3 = vector.load %arg4[%c0_3, %c0_4] : memref<1x128xf32, #tpu.memory_space<vmem>>, vector<1x128xf32>
    %4 = vector.broadcast %3 : vector<1x128xf32> to vector<256x128xf32>
    %5 = arith.addf %2, %4 : vector<256x128xf32>
    %cst_5 = arith.constant 0.000000e+00 : f32
    %6 = vector.broadcast %cst_5 : f32 to vector<256x128xf32>
    %7 = arith.maximumf %5, %6 : vector<256x128xf32>
    %8 = arith.truncf %7 : vector<256x128xf32> to vector<256x128xbf16>
    %c0_6 = arith.constant 0 : index
    %c0_7 = arith.constant 0 : index
    %9 = vector.load %arg5[%c0_6, %c0_7] : memref<256x128xbf16, #tpu.memory_space<vmem>>, vector<256x128xbf16>
    tpu.vector_store %arg5[%c0_6, %c0_7], %8 {strides = array<i32>} : memref<256x128xbf16, #tpu.memory_space<vmem>>, vector<256x128xbf16>,
    return
  }
  func.func @transform_0(%arg0: i32, %arg1: i32) -> (i32, i32) {
    %c0_i32 = arith.constant 0 : i32
    %c0_i32_0 = arith.constant 0 : i32
    return %arg0, %c0_i32 : i32, i32
  }
  func.func @transform_1(%arg0: i32, %arg1: i32) -> (i32, i32) {
    %c0_i32 = arith.constant 0 : i32
    %c0_i32_0 = arith.constant 0 : i32
    return %c0_i32, %arg1 : i32, i32
  }
  func.func @transform_2(%arg0: i32, %arg1: i32) -> (i32, i32) {
    %c0_i32 = arith.constant 0 : i32
    %c0_i32_0 = arith.constant 0 : i32
    return %c0_i32, %arg1 : i32, i32
  }
  func.func @transform_3(%arg0: i32, %arg1: i32) -> (i32, i32) {
    %c0_i32 = arith.constant 0 : i32
    return %arg0, %arg1 : i32, i32
  }
}

module attributes {stable_mosaic.version = 11 : i64} {
  func.func @_gemm_single_k_kernel(%arg0: i32, %arg1: i32, %arg2: memref<128x128xbf16, #tpu.memory_space<vmem>>, %arg3: memref<128x128xbf16, #tpu.memory_space<vmem>>, %arg4: memref<1x128xf32, #tpu.memory_space<vmem>>, %arg5: memref<128x128xbf16, #tpu.memory_space<vmem>>) attributes {dimension_semantics = [#tpu.dimension_semantics<parallel>, #tpu.dimension_semantics<parallel>], iteration_bounds = array<i64: 1, 1>, scalar_prefetch = 0 : i64, scratch_operands = 0 : i64, tpu.core_type = #tpu.core_type<tc>, window_params = [{transform_indices = @transform_0, window_bounds = array<i64: 128, 128>}, {transform_indices = @transform_1, window_bounds = array<i64: 128, 128>}, {transform_indices = @transform_2, window_bounds = array<i64: 1, 128>}, {transform_indices = @transform_3, window_bounds = array<i64: 128, 128>}]} {
    %c0 = arith.constant 0 : index
    %c0_0 = arith.constant 0 : index
    %0 = vector.load %arg2[%c0, %c0_0] : memref<128x128xbf16, #tpu.memory_space<vmem>>, vector<128x128xbf16>
    %c0_1 = arith.constant 0 : index
    %c0_2 = arith.constant 0 : index
    %1 = vector.load %arg3[%c0_1, %c0_2] : memref<128x128xbf16, #tpu.memory_space<vmem>>, vector<128x128xbf16>
    %cst = arith.constant dense<0.000000e+00> : vector<128x128xf32>
    %2 = tpu.matmul %0, %1, %cst {dimension_numbers = #tpu.dot_dimension_numbers<[1], [0], [0], [1], [0, 0, 1, 1], [], []>} : vector<128x128xbf16>, vector<128x128xbf16>, vector<128x128xf32> -> vector<128x128xf32>
    %c0_3 = arith.constant 0 : index
    %c0_4 = arith.constant 0 : index
    %3 = vector.load %arg4[%c0_3, %c0_4] : memref<1x128xf32, #tpu.memory_space<vmem>>, vector<1x128xf32>
    %4 = vector.broadcast %3 : vector<1x128xf32> to vector<128x128xf32>
    %5 = arith.addf %2, %4 : vector<128x128xf32>
    %cst_5 = arith.constant 0.000000e+00 : f32
    %6 = vector.broadcast %cst_5 : f32 to vector<128x128xf32>
    %7 = arith.maximumf %5, %6 : vector<128x128xf32>
    %8 = arith.truncf %7 : vector<128x128xf32> to vector<128x128xbf16>
    %c0_6 = arith.constant 0 : index
    %c0_7 = arith.constant 0 : index
    %9 = vector.load %arg5[%c0_6, %c0_7] : memref<128x128xbf16, #tpu.memory_space<vmem>>, vector<128x128xbf16>
    tpu.vector_store %arg5[%c0_6, %c0_7], %8 {strides = array<i32>} : memref<128x128xbf16, #tpu.memory_space<vmem>>, vector<128x128xbf16>,
    return
  }
  func.func @transform_0(%arg0: i32, %arg1: i32) -> (i32, i32) {
    %c0_i32 = arith.constant 0 : i32
    %c0_i32_0 = arith.constant 0 : i32
    return %arg0, %c0_i32 : i32, i32
  }
  func.func @transform_1(%arg0: i32, %arg1: i32) -> (i32, i32) {
    %c0_i32 = arith.constant 0 : i32
    %c0_i32_0 = arith.constant 0 : i32
    return %c0_i32, %arg1 : i32, i32
  }
  func.func @transform_2(%arg0: i32, %arg1: i32) -> (i32, i32) {
    %c0_i32 = arith.constant 0 : i32
    %c0_i32_0 = arith.constant 0 : i32
    return %c0_i32, %arg1 : i32, i32
  }
  func.func @transform_3(%arg0: i32, %arg1: i32) -> (i32, i32) {
    %c0_i32 = arith.constant 0 : i32
    return %arg0, %arg1 : i32, i32
  }
}

module attributes {stable_mosaic.version = 11 : i64} {
  func.func @_gemm_single_k_kernel(%arg0: i32, %arg1: i32, %arg2: memref<32x256xbf16, #tpu.memory_space<vmem>>, %arg3: memref<256x128xbf16, #tpu.memory_space<vmem>>, %arg4: memref<1x128xf32, #tpu.memory_space<vmem>>, %arg5: memref<32x128xbf16, #tpu.memory_space<vmem>>) attributes {dimension_semantics = [#tpu.dimension_semantics<parallel>, #tpu.dimension_semantics<parallel>], iteration_bounds = array<i64: 1, 1>, scalar_prefetch = 0 : i64, scratch_operands = 0 : i64, tpu.core_type = #tpu.core_type<tc>, window_params = [{transform_indices = @transform_0, window_bounds = array<i64: 32, 256>}, {transform_indices = @transform_1, window_bounds = array<i64: 256, 128>}, {transform_indices = @transform_2, window_bounds = array<i64: 1, 128>}, {transform_indices = @transform_3, window_bounds = array<i64: 32, 128>}]} {
    %c0 = arith.constant 0 : index
    %c0_0 = arith.constant 0 : index
    %0 = vector.load %arg2[%c0, %c0_0] : memref<32x256xbf16, #tpu.memory_space<vmem>>, vector<32x256xbf16>
    %c0_1 = arith.constant 0 : index
    %c0_2 = arith.constant 0 : index
    %1 = vector.load %arg3[%c0_1, %c0_2] : memref<256x128xbf16, #tpu.memory_space<vmem>>, vector<256x128xbf16>
    %cst = arith.constant dense<0.000000e+00> : vector<32x128xf32>
    %2 = tpu.matmul %0, %1, %cst {dimension_numbers = #tpu.dot_dimension_numbers<[1], [0], [0], [1], [0, 0, 1, 1], [], []>} : vector<32x256xbf16>, vector<256x128xbf16>, vector<32x128xf32> -> vector<32x128xf32>
    %c0_3 = arith.constant 0 : index
    %c0_4 = arith.constant 0 : index
    %3 = vector.load %arg4[%c0_3, %c0_4] : memref<1x128xf32, #tpu.memory_space<vmem>>, vector<1x128xf32>
    %4 = vector.broadcast %3 : vector<1x128xf32> to vector<32x128xf32>
    %5 = arith.addf %2, %4 : vector<32x128xf32>
    %cst_5 = arith.constant 0.000000e+00 : f32
    %6 = vector.broadcast %cst_5 : f32 to vector<32x128xf32>
    %7 = arith.maximumf %5, %6 : vector<32x128xf32>
    %8 = arith.truncf %7 : vector<32x128xf32> to vector<32x128xbf16>
    %c0_6 = arith.constant 0 : index
    %c0_7 = arith.constant 0 : index
    %9 = vector.load %arg5[%c0_6, %c0_7] : memref<32x128xbf16, #tpu.memory_space<vmem>>, vector<32x128xbf16>
    tpu.vector_store %arg5[%c0_6, %c0_7], %8 {strides = array<i32>} : memref<32x128xbf16, #tpu.memory_space<vmem>>, vector<32x128xbf16>,
    return
  }
  func.func @transform_0(%arg0: i32, %arg1: i32) -> (i32, i32) {
    %c0_i32 = arith.constant 0 : i32
    %c0_i32_0 = arith.constant 0 : i32
    return %arg0, %c0_i32 : i32, i32
  }
  func.func @transform_1(%arg0: i32, %arg1: i32) -> (i32, i32) {
    %c0_i32 = arith.constant 0 : i32
    %c0_i32_0 = arith.constant 0 : i32
    return %c0_i32, %arg1 : i32, i32
  }
  func.func @transform_2(%arg0: i32, %arg1: i32) -> (i32, i32) {
    %c0_i32 = arith.constant 0 : i32
    %c0_i32_0 = arith.constant 0 : i32
    return %c0_i32, %arg1 : i32, i32
  }
  func.func @transform_3(%arg0: i32, %arg1: i32) -> (i32, i32) {
    %c0_i32 = arith.constant 0 : i32
    return %arg0, %arg1 : i32, i32
  }
}

module attributes {stable_mosaic.version = 11 : i64} {
  func.func @_gemm_single_k_kernel(%arg0: i32, %arg1: i32, %arg2: memref<16x256xbf16, #tpu.memory_space<vmem>>, %arg3: memref<256x128xbf16, #tpu.memory_space<vmem>>, %arg4: memref<1x128xf32, #tpu.memory_space<vmem>>, %arg5: memref<16x128xbf16, #tpu.memory_space<vmem>>) attributes {dimension_semantics = [#tpu.dimension_semantics<parallel>, #tpu.dimension_semantics<parallel>], iteration_bounds = array<i64: 1, 1>, scalar_prefetch = 0 : i64, scratch_operands = 0 : i64, tpu.core_type = #tpu.core_type<tc>, window_params = [{transform_indices = @transform_0, window_bounds = array<i64: 16, 256>}, {transform_indices = @transform_1, window_bounds = array<i64: 256, 128>}, {transform_indices = @transform_2, window_bounds = array<i64: 1, 128>}, {transform_indices = @transform_3, window_bounds = array<i64: 16, 128>}]} {
    %c0 = arith.constant 0 : index
    %c0_0 = arith.constant 0 : index
    %0 = vector.load %arg2[%c0, %c0_0] : memref<16x256xbf16, #tpu.memory_space<vmem>>, vector<16x256xbf16>
    %c0_1 = arith.constant 0 : index
    %c0_2 = arith.constant 0 : index
    %1 = vector.load %arg3[%c0_1, %c0_2] : memref<256x128xbf16, #tpu.memory_space<vmem>>, vector<256x128xbf16>
    %cst = arith.constant dense<0.000000e+00> : vector<16x128xf32>
    %2 = tpu.matmul %0, %1, %cst {dimension_numbers = #tpu.dot_dimension_numbers<[1], [0], [0], [1], [0, 0, 1, 1], [], []>} : vector<16x256xbf16>, vector<256x128xbf16>, vector<16x128xf32> -> vector<16x128xf32>
    %c0_3 = arith.constant 0 : index
    %c0_4 = arith.constant 0 : index
    %3 = vector.load %arg4[%c0_3, %c0_4] : memref<1x128xf32, #tpu.memory_space<vmem>>, vector<1x128xf32>
    %4 = vector.broadcast %3 : vector<1x128xf32> to vector<16x128xf32>
    %5 = arith.addf %2, %4 : vector<16x128xf32>
    %cst_5 = arith.constant 0.000000e+00 : f32
    %6 = vector.broadcast %cst_5 : f32 to vector<16x128xf32>
    %7 = arith.maximumf %5, %6 : vector<16x128xf32>
    %8 = arith.truncf %7 : vector<16x128xf32> to vector<16x128xbf16>
    %c0_6 = arith.constant 0 : index
    %c0_7 = arith.constant 0 : index
    %9 = vector.load %arg5[%c0_6, %c0_7] : memref<16x128xbf16, #tpu.memory_space<vmem>>, vector<16x128xbf16>
    tpu.vector_store %arg5[%c0_6, %c0_7], %8 {strides = array<i32>} : memref<16x128xbf16, #tpu.memory_space<vmem>>, vector<16x128xbf16>,
    return
  }
  func.func @transform_0(%arg0: i32, %arg1: i32) -> (i32, i32) {
    %c0_i32 = arith.constant 0 : i32
    %c0_i32_0 = arith.constant 0 : i32
    return %arg0, %c0_i32 : i32, i32
  }
  func.func @transform_1(%arg0: i32, %arg1: i32) -> (i32, i32) {
    %c0_i32 = arith.constant 0 : i32
    %c0_i32_0 = arith.constant 0 : i32
    return %c0_i32, %arg1 : i32, i32
  }
  func.func @transform_2(%arg0: i32, %arg1: i32) -> (i32, i32) {
    %c0_i32 = arith.constant 0 : i32
    %c0_i32_0 = arith.constant 0 : i32
    return %c0_i32, %arg1 : i32, i32
  }
  func.func @transform_3(%arg0: i32, %arg1: i32) -> (i32, i32) {
    %c0_i32 = arith.constant 0 : i32
    return %arg0, %arg1 : i32, i32
  }
}

module attributes {stable_mosaic.version = 11 : i64} {
  func.func @_gemm_single_k_kernel(%arg0: i32, %arg1: i32, %arg2: memref<16x128xbf16, #tpu.memory_space<vmem>>, %arg3: memref<128x128xbf16, #tpu.memory_space<vmem>>, %arg4: memref<1x128xf32, #tpu.memory_space<vmem>>, %arg5: memref<16x128xbf16, #tpu.memory_space<vmem>>) attributes {dimension_semantics = [#tpu.dimension_semantics<parallel>, #tpu.dimension_semantics<parallel>], iteration_bounds = array<i64: 1, 1>, scalar_prefetch = 0 : i64, scratch_operands = 0 : i64, tpu.core_type = #tpu.core_type<tc>, window_params = [{transform_indices = @transform_0, window_bounds = array<i64: 16, 128>}, {transform_indices = @transform_1, window_bounds = array<i64: 128, 128>}, {transform_indices = @transform_2, window_bounds = array<i64: 1, 128>}, {transform_indices = @transform_3, window_bounds = array<i64: 16, 128>}]} {
    %c0 = arith.constant 0 : index
    %c0_0 = arith.constant 0 : index
    %0 = vector.load %arg2[%c0, %c0_0] : memref<16x128xbf16, #tpu.memory_space<vmem>>, vector<16x128xbf16>
    %c0_1 = arith.constant 0 : index
    %c0_2 = arith.constant 0 : index
    %1 = vector.load %arg3[%c0_1, %c0_2] : memref<128x128xbf16, #tpu.memory_space<vmem>>, vector<128x128xbf16>
    %cst = arith.constant dense<0.000000e+00> : vector<16x128xf32>
    %2 = tpu.matmul %0, %1, %cst {dimension_numbers = #tpu.dot_dimension_numbers<[1], [0], [0], [1], [0, 0, 1, 1], [], []>} : vector<16x128xbf16>, vector<128x128xbf16>, vector<16x128xf32> -> vector<16x128xf32>
    %c0_3 = arith.constant 0 : index
    %c0_4 = arith.constant 0 : index
    %3 = vector.load %arg4[%c0_3, %c0_4] : memref<1x128xf32, #tpu.memory_space<vmem>>, vector<1x128xf32>
    %4 = vector.broadcast %3 : vector<1x128xf32> to vector<16x128xf32>
    %5 = arith.addf %2, %4 : vector<16x128xf32>
    %cst_5 = arith.constant 0.000000e+00 : f32
    %6 = vector.broadcast %cst_5 : f32 to vector<16x128xf32>
    %7 = arith.maximumf %5, %6 : vector<16x128xf32>
    %8 = arith.truncf %7 : vector<16x128xf32> to vector<16x128xbf16>
    %c0_6 = arith.constant 0 : index
    %c0_7 = arith.constant 0 : index
    %9 = vector.load %arg5[%c0_6, %c0_7] : memref<16x128xbf16, #tpu.memory_space<vmem>>, vector<16x128xbf16>
    tpu.vector_store %arg5[%c0_6, %c0_7], %8 {strides = array<i32>} : memref<16x128xbf16, #tpu.memory_space<vmem>>, vector<16x128xbf16>,
    return
  }
  func.func @transform_0(%arg0: i32, %arg1: i32) -> (i32, i32) {
    %c0_i32 = arith.constant 0 : i32
    %c0_i32_0 = arith.constant 0 : i32
    return %arg0, %c0_i32 : i32, i32
  }
  func.func @transform_1(%arg0: i32, %arg1: i32) -> (i32, i32) {
    %c0_i32 = arith.constant 0 : i32
    %c0_i32_0 = arith.constant 0 : i32
    return %c0_i32, %arg1 : i32, i32
  }
  func.func @transform_2(%arg0: i32, %arg1: i32) -> (i32, i32) {
    %c0_i32 = arith.constant 0 : i32
    %c0_i32_0 = arith.constant 0 : i32
    return %c0_i32, %arg1 : i32, i32
  }
  func.func @transform_3(%arg0: i32, %arg1: i32) -> (i32, i32) {
    %c0_i32 = arith.constant 0 : i32
    return %arg0, %arg1 : i32, i32
  }
}

module attributes {stable_mosaic.version = 11 : i64} {
  func.func @_gemm_single_k_kernel(%arg0: i32, %arg1: i32, %arg2: memref<16x128xbf16, #tpu.memory_space<vmem>>, %arg3: memref<128x128xbf16, #tpu.memory_space<vmem>>, %arg4: memref<1x128xf32, #tpu.memory_space<vmem>>, %arg5: memref<16x128xf32, #tpu.memory_space<vmem>>) attributes {dimension_semantics = [#tpu.dimension_semantics<parallel>, #tpu.dimension_semantics<parallel>], iteration_bounds = array<i64: 1, 1>, scalar_prefetch = 0 : i64, scratch_operands = 0 : i64, tpu.core_type = #tpu.core_type<tc>, window_params = [{transform_indices = @transform_0, window_bounds = array<i64: 16, 128>}, {transform_indices = @transform_1, window_bounds = array<i64: 128, 128>}, {transform_indices = @transform_2, window_bounds = array<i64: 1, 128>}, {transform_indices = @transform_3, window_bounds = array<i64: 16, 128>}]} {
    %c0 = arith.constant 0 : index
    %c0_0 = arith.constant 0 : index
    %0 = vector.load %arg2[%c0, %c0_0] : memref<16x128xbf16, #tpu.memory_space<vmem>>, vector<16x128xbf16>
    %c0_1 = arith.constant 0 : index
    %c0_2 = arith.constant 0 : index
    %1 = vector.load %arg3[%c0_1, %c0_2] : memref<128x128xbf16, #tpu.memory_space<vmem>>, vector<128x128xbf16>
    %cst = arith.constant dense<0.000000e+00> : vector<16x128xf32>
    %2 = tpu.matmul %0, %1, %cst {dimension_numbers = #tpu.dot_dimension_numbers<[1], [0], [0], [1], [0, 0, 1, 1], [], []>} : vector<16x128xbf16>, vector<128x128xbf16>, vector<16x128xf32> -> vector<16x128xf32>
    %c0_3 = arith.constant 0 : index
    %c0_4 = arith.constant 0 : index
    %3 = vector.load %arg4[%c0_3, %c0_4] : memref<1x128xf32, #tpu.memory_space<vmem>>, vector<1x128xf32>
    %4 = vector.broadcast %3 : vector<1x128xf32> to vector<16x128xf32>
    %5 = arith.addf %2, %4 : vector<16x128xf32>
    %c0_5 = arith.constant 0 : index
    %c0_6 = arith.constant 0 : index
    %6 = vector.load %arg5[%c0_5, %c0_6] : memref<16x128xf32, #tpu.memory_space<vmem>>, vector<16x128xf32>
    tpu.vector_store %arg5[%c0_5, %c0_6], %5 {strides = array<i32>} : memref<16x128xf32, #tpu.memory_space<vmem>>, vector<16x128xf32>,
    return
  }
  func.func @transform_0(%arg0: i32, %arg1: i32) -> (i32, i32) {
    %c0_i32 = arith.constant 0 : i32
    %c0_i32_0 = arith.constant 0 : i32
    return %arg0, %c0_i32 : i32, i32
  }
  func.func @transform_1(%arg0: i32, %arg1: i32) -> (i32, i32) {
    %c0_i32 = arith.constant 0 : i32
    %c0_i32_0 = arith.constant 0 : i32
    return %c0_i32, %arg1 : i32, i32
  }
  func.func @transform_2(%arg0: i32, %arg1: i32) -> (i32, i32) {
    %c0_i32 = arith.constant 0 : i32
    %c0_i32_0 = arith.constant 0 : i32
    return %c0_i32, %arg1 : i32, i32
  }
  func.func @transform_3(%arg0: i32, %arg1: i32) -> (i32, i32) {
    %c0_i32 = arith.constant 0 : i32
    return %arg0, %arg1 : i32, i32
  }
}

</mosaic_0001>

<bundles_post_ra>
// kernel: _forward.7
= control target key start
LH: loop header
LB: loop body
LE: loop exit
PB: predicated region body
PF: predicated region fallthrough
CT: control target
= control target key end

     0   :  { %s1257_s12 = smov 0   ;;  %s1259_s13 = smov 0   ;;  %s1394_s0 = inlined_call_operand.vmem [shape: bf16[512,128], index: 0, kind: input, shape index: {}]   ;;  %s1395_s1 = inlined_call_operand.vmem [shape: bf16[128,128], index: 1, kind: input, shape index: {}]   ;;  %s1396_s2 = inlined_call_operand.vmem [shape: f32[1,128], index: 2, kind: input, shape index: {}]   ;;  %s1397_s3 = inlined_call_operand.vmem [shape: bf16[512,128], index: 3, kind: output, shape index: {}]  }
   0x1   :  { %s1261_s14 = smov 0  }
   0x2 LB: > { %s25_s15 = sadd.s32 1, %s1231_s13  ;;  %p886_p0 = scmp.ge.s32.totalorder %s1235_s14, 1  ;;  %s1235_s14 = sphi %s1261_s14, %s13_s14   ;;  %s1231_s13 = sphi %s1259_s13, %s1399_s13   ;;  %s1227_s12 = sphi %s1257_s12, %s1398_s12  }
   0x3   : > { %p27_p1 = scmp.ge.s32.totalorder %s25_s15, 2  ;;  %p169_p2 = scmp.lt.s32.totalorder %s1235_s14, 3 }
   0x5   : > { %s1401_s15 = smov (%p27_p1, %s25_s15), 0  ;;  %p170_p3 = pnand %p886_p0, %p169_p2 }
   0x6   : > { %v1189_v0 = vld [vmem:[%s1395_s1] sm:$0xff] (!%p170_p3)   ;;  %s887_s18 = sshll.u32 (!%p170_p3), %s1227_s12, 5  ;;  %v1190_v1 = vld [vmem:[%s1395_s1 + $0x8] sm:$0xff] (!%p170_p3)   ;;  %v1191_v2 = vld [vmem:[%s1395_s1 + $0x10] sm:$0xff] (!%p170_p3)  }
   0x7   : > { %173 = sbr.rel (%p170_p3) target bundleno = 285 (0x11d), region = 32  ;;  %p204_p4 = scmp.lt.s32.totalorder (!%p170_p3), %s887_s18, 63  ;;  %1101 = vmatprep.subr.bf16.mxu0 (!%p170_p3), %v1189_v0  ;;  %1149 = vmatprep.subr.bf16.mxu1 (!%p170_p3), %v1189_v0  ;;  %v1192_v3 = vld [vmem:[%s1395_s1 + $0x18] sm:$0xff] (!%p170_p3)   ;;  %v1193_v6 = vld [vmem:[%s1395_s1 + $0x20] sm:$0xff] (!%p170_p3)   ;;  %v1194_v7 = vld [vmem:[%s1395_s1 + $0x28] sm:$0xff] (!%p170_p3)  }
   0x8   : > { %1102 = vmatpush3.bf16.msra.mxu0 (!%p170_p3), %v1189_v0  ;;  %1157 = vmatpush3.bf16.msra.mxu1 (!%p170_p3), %v1189_v0  ;;  %v1195_v8 = vld [vmem:[%s1395_s1 + $0x30] sm:$0xff] (!%p170_p3)   ;;  %v1196_v9 = vld [vmem:[%s1395_s1 + $0x38] sm:$0xff] (!%p170_p3)   ;;  %v1328_v24 = vld [vmem:[%s1396_s2] ss:$0 sm:$0xff] (!%p170_p3) }
   0x9   : > { %1103 = vmatprep.subr.bf16.mxu0 (!%p170_p3), %v1190_v1  ;;  %1150 = vmatprep.subr.bf16.mxu1 (!%p170_p3), %v1190_v1 }
   0xc   : > { %1104 = vmatpush3.bf16.msra.mxu0 (!%p170_p3), %v1190_v1  ;;  %1158 = vmatpush3.bf16.msra.mxu1 (!%p170_p3), %v1190_v1 }
   0xd   : > { %1105 = vmatprep.subr.bf16.mxu0 (!%p170_p3), %v1191_v2  ;;  %1151 = vmatprep.subr.bf16.mxu1 (!%p170_p3), %v1191_v2 }
   0xe   : > { %s1403_s18 = smov (!%p204_p4, %s887_s18), 63 }
   0xf   : > { %s888_s23 = sshll.u32 %s1403_s18, 2 }
  0x10   : > { %s1292_s26 = scalar_lea.vmem %s1394_s0, %s888_s23  ;;  %1106 = vmatpush3.bf16.msra.mxu0 %v1191_v2  ;;  %1159 = vmatpush3.bf16.msra.mxu1 %v1191_v2  ;;  %s1343_s17 = scalar_lea.vmem %s1397_s3, %s888_s23 }
  0x11   : > { %v1197_v4 = vld [vmem:[%s1292_s26] sm:$0xff]   ;;  %1107 = vmatprep.subr.bf16.mxu0 %v1192_v3  ;;  %1152 = vmatprep.subr.bf16.mxu1 %v1192_v3  ;;  %v1199_v10 = vld [vmem:[%s1292_s26 + $0x8] sm:$0xff]   ;;  %v1201_v12 = vld [vmem:[%s1292_s26 + $0x10] sm:$0xff]  }
  0x12   : > { %v1198_v5 = vld [vmem:[%s1292_s26 + $0x40] sm:$0xff]   ;;  %1117 = vmatprep.mubr.bf16.mxu0 %v1197_v4  ;;  %v1200_v11 = vld [vmem:[%s1292_s26 + $0x48] sm:$0xff]   ;;  %v1202_v13 = vld [vmem:[%s1292_s26 + $0x50] sm:$0xff]  }
  0x13   : > { %1133 = vmatprep.mubr.bf16.mxu1 %v1198_v5  ;;  %v1203_v14 = vld [vmem:[%s1292_s26 + $0x18] sm:$0xff]   ;;  %v1205_v16 = vld [vmem:[%s1292_s26 + $0x20] sm:$0xff]   ;;  %v1207_v18 = vld [vmem:[%s1292_s26 + $0x28] sm:$0xff]  }
  0x14   : > { %1108 = vmatpush3.bf16.msra.mxu0 %v1192_v3  ;;  %1160 = vmatpush3.bf16.msra.mxu1 %v1192_v3  ;;  %v1204_v15 = vld [vmem:[%s1292_s26 + $0x58] sm:$0xff]   ;;  %v1206_v17 = vld [vmem:[%s1292_s26 + $0x60] sm:$0xff]   ;;  %v1208_v19 = vld [vmem:[%s1292_s26 + $0x68] sm:$0xff]  }
  0x15   : > { %1109 = vmatprep.subr.bf16.mxu0 %v1193_v6  ;;  %1153 = vmatprep.subr.bf16.mxu1 %v1193_v6  ;;  %v1209_v20 = vld [vmem:[%s1292_s26 + $0x30] sm:$0xff]   ;;  %v1211_v22 = vld [vmem:[%s1292_s26 + $0x38] sm:$0xff]  }
  0x16   : > { %v1210_v21 = vld [vmem:[%s1292_s26 + $0x70] sm:$0xff]   ;;  %v1212_v23 = vld [vmem:[%s1292_s26 + $0x78] sm:$0xff]  }
  0x18   : > { %1110 = vmatpush3.bf16.msra.mxu0 %v1193_v6  ;;  %1161 = vmatpush3.bf16.msra.mxu1 %v1193_v6 }
  0x19   : > { %1111 = vmatprep.subr.bf16.mxu0 %v1194_v7  ;;  %1154 = vmatprep.subr.bf16.mxu1 %v1194_v7 }
  0x1c   : > { %1112 = vmatpush3.bf16.msra.mxu0 %v1194_v7  ;;  %1162 = vmatpush3.bf16.msra.mxu1 %v1194_v7 }
  0x1d   : > { %1113 = vmatprep.subr.bf16.mxu0 %v1195_v8  ;;  %1155 = vmatprep.subr.bf16.mxu1 %v1195_v8 }
  0x20   : > { %1114 = vmatpush3.bf16.msra.mxu0 %v1195_v8  ;;  %1163 = vmatpush3.bf16.msra.mxu1 %v1195_v8 }
  0x21   : > { %1115 = vmatprep.subr.bf16.mxu0 %v1196_v9  ;;  %1156 = vmatprep.subr.bf16.mxu1 %v1196_v9 }
  0x24   : > { %1116 = vmatpush3.bf16.msra.mxu0 %v1196_v9  ;;  %1164 = vmatpush3.bf16.msra.mxu1 %v1196_v9 }
  0x27   : > { %1118 = vmatmul.mubr.bf16.vlgmr.msra.gmra.mrb[0].mxu0 %v1199_v10  ;;  %1134 = vmatmul.mubr.bf16.vlgmr.msra.gmra.mrb[0].mxu1 %v1200_v11 }
  0x28   : > { %1121 = vmatprep.mubr.bf16.mxu0 %v1201_v12  ;;  %1137 = vmatprep.mubr.bf16.mxu1 %v1202_v13 }
  0x2f   : > { %1122 = vmatmul.mubr.bf16.gmra.mrb[4].mxu0 %v1203_v14  ;;  %1138 = vmatmul.mubr.bf16.gmra.mrb[4].mxu1 %v1204_v15 }
  0x30   : > { %1125 = vmatprep.mubr.bf16.mxu0 %v1205_v16  ;;  %1141 = vmatprep.mubr.bf16.mxu1 %v1206_v17 }
  0x37   : > { %1126 = vmatmul.mubr.bf16.gmra.mrb[8].mxu0 %v1207_v18  ;;  %1142 = vmatmul.mubr.bf16.gmra.mrb[8].mxu1 %v1208_v19 }
  0x38   : > { %1129 = vmatprep.mubr.bf16.mxu0 %v1209_v20  ;;  %1145 = vmatprep.mubr.bf16.mxu1 %v1210_v21 }
  0x3f   : > { %1130 = vmatmul.mubr.bf16.gmra.mrb[12].mxu0 %v1211_v22  ;;  %1146 = vmatmul.mubr.bf16.gmra.mrb[12].mxu1 %v1212_v23 }
  0xfa   : > { %v1119_v25 = vpop.f32.mrb[0].mxu0  ;;  %v1135_v26 = vpop.f32.mrb[0].mxu1 }
  0xfb   : > { %v468_v27 = vadd.f32 %v1119_v25, %v1328_v24  ;;  %v532_v28 = vadd.f32 %v1135_v26, %v1328_v24  ;;  %v459_v29 = vpop.f32.mrb[1].mxu0  ;;  %v523_v30 = vpop.f32.mrb[1].mxu1 }
  0xfc   : > { %v460_v31 = vadd.f32 %v1328_v24, %v459_v29  ;;  %v524_v32 = vadd.f32 %v1328_v24, %v523_v30  ;;  %v1120_v33 = vpop.f32.mrb[2].mxu0  ;;  %v1136_v34 = vpop.f32.mrb[2].mxu1 }
  0xfd   : > { %v471_v35 = vadd.f32 %v1120_v33, %v1328_v24  ;;  %v535_v36 = vadd.f32 %v1136_v34, %v1328_v24  ;;  %v462_v37 = vpop.f32.mrb[3].mxu0  ;;  %v526_v38 = vpop.f32.mrb[3].mxu1  ;;  %v588_v41 = vmax.f32 %v468_v27, 0.0  ;;  %v604_v42 = vmax.f32 %v532_v28, 0.0 }
  0xfe   : > { %v463_v39 = vadd.f32 %v1328_v24, %v462_v37  ;;  %v527_v40 = vadd.f32 %v1328_v24, %v526_v38  ;;  %v586_v45 = vmax.f32 %v460_v31, 0.0  ;;  %v602_v46 = vmax.f32 %v524_v32, 0.0 }
  0xff   : > { %v589_v43 = vmax.f32 %v471_v35, 0.0  ;;  %v605_v44 = vmax.f32 %v535_v36, 0.0 }
 0x100   : > { %v587_v47 = vmax.f32 %v463_v39, 0.0  ;;  %v603_v48 = vmax.f32 %v527_v40, 0.0 }
 0x101   : > { %v990_v49 = vpack.c.bf16 %v589_v43, %v588_v41  ;;  %v1030_v50 = vpack.c.bf16 %v605_v44, %v604_v42 }
 0x102   : > { %v985_v51 = vpack.c.bf16 %v587_v47, %v586_v45  ;;  %v1025_v52 = vpack.c.bf16 %v603_v48, %v602_v46  ;;  %v1123_v53 = vpop.f32.mrb[4].mxu0  ;;  %v1139_v54 = vpop.f32.mrb[4].mxu1 }
 0x103   : > { %1062 = vst [vmem:[%s1343_s17 + $0x8] sm:$0xff] %v990_v49   ;;  %1070 = vst [vmem:[%s1343_s17 + $0x48] sm:$0xff] %v1030_v50   ;;  %v484_v55 = vadd.f32 %v1123_v53, %v1328_v24  ;;  %v548_v56 = vadd.f32 %v1139_v54, %v1328_v24  ;;  %v475_v57 = vpop.f32.mrb[5].mxu0  ;;  %v539_v58 = vpop.f32.mrb[5].mxu1 }
 0x104   : > { %986 = vst [vmem:[%s1343_s17] sm:$0xff] %v985_v51   ;;  %1069 = vst [vmem:[%s1343_s17 + $0x40] sm:$0xff] %v1025_v52   ;;  %v476_v59 = vadd.f32 %v1328_v24, %v475_v57  ;;  %v540_v60 = vadd.f32 %v1328_v24, %v539_v58  ;;  %v1124_v61 = vpop.f32.mrb[6].mxu0  ;;  %v1140_v62 = vpop.f32.mrb[6].mxu1 }
 0x105   : > { %v487_v63 = vadd.f32 %v1124_v61, %v1328_v24  ;;  %v551_v0 = vadd.f32 %v1140_v62, %v1328_v24  ;;  %v478_v1 = vpop.f32.mrb[7].mxu0  ;;  %v542_v2 = vpop.f32.mrb[7].mxu1  ;;  %v592_v5 = vmax.f32 %v484_v55, 0.0  ;;  %v608_v6 = vmax.f32 %v548_v56, 0.0 }
 0x106   : > { %v479_v3 = vadd.f32 %v1328_v24, %v478_v1  ;;  %v543_v4 = vadd.f32 %v1328_v24, %v542_v2  ;;  %v590_v9 = vmax.f32 %v476_v59, 0.0  ;;  %v606_v10 = vmax.f32 %v540_v60, 0.0 }
 0x107   : > { %v593_v7 = vmax.f32 %v487_v63, 0.0  ;;  %v609_v8 = vmax.f32 %v551_v0, 0.0 }
 0x108   : > { %v591_v11 = vmax.f32 %v479_v3, 0.0  ;;  %v607_v12 = vmax.f32 %v543_v4, 0.0 }
 0x109   : > { %v1000_v13 = vpack.c.bf16 %v593_v7, %v592_v5  ;;  %v1040_v14 = vpack.c.bf16 %v609_v8, %v608_v6 }
 0x10a   : > { %v995_v15 = vpack.c.bf16 %v591_v11, %v590_v9  ;;  %v1035_v16 = vpack.c.bf16 %v607_v12, %v606_v10  ;;  %v1127_v17 = vpop.f32.mrb[8].mxu0  ;;  %v1143_v18 = vpop.f32.mrb[8].mxu1 }
 0x10b   : > { %1064 = vst [vmem:[%s1343_s17 + $0x18] sm:$0xff] %v1000_v13   ;;  %1072 = vst [vmem:[%s1343_s17 + $0x58] sm:$0xff] %v1040_v14   ;;  %v500_v19 = vadd.f32 %v1127_v17, %v1328_v24  ;;  %v564_v20 = vadd.f32 %v1143_v18, %v1328_v24  ;;  %v491_v21 = vpop.f32.mrb[9].mxu0  ;;  %v555_v22 = vpop.f32.mrb[9].mxu1 }
 0x10c   : > { %1063 = vst [vmem:[%s1343_s17 + $0x10] sm:$0xff] %v995_v15   ;;  %1071 = vst [vmem:[%s1343_s17 + $0x50] sm:$0xff] %v1035_v16   ;;  %v492_v23 = vadd.f32 %v1328_v24, %v491_v21  ;;  %v556_v25 = vadd.f32 %v1328_v24, %v555_v22  ;;  %v1128_v26 = vpop.f32.mrb[10].mxu0  ;;  %v1144_v27 = vpop.f32.mrb[10].mxu1 }
 0x10d   : > { %v503_v28 = vadd.f32 %v1128_v26, %v1328_v24  ;;  %v567_v29 = vadd.f32 %v1144_v27, %v1328_v24  ;;  %v494_v30 = vpop.f32.mrb[11].mxu0  ;;  %v558_v31 = vpop.f32.mrb[11].mxu1  ;;  %v596_v34 = vmax.f32 %v500_v19, 0.0  ;;  %v612_v35 = vmax.f32 %v564_v20, 0.0 }
 0x10e   : > { %v495_v32 = vadd.f32 %v1328_v24, %v494_v30  ;;  %v559_v33 = vadd.f32 %v1328_v24, %v558_v31  ;;  %v594_v38 = vmax.f32 %v492_v23, 0.0  ;;  %v610_v39 = vmax.f32 %v556_v25, 0.0 }
 0x10f   : > { %v597_v36 = vmax.f32 %v503_v28, 0.0  ;;  %v613_v37 = vmax.f32 %v567_v29, 0.0 }
 0x110   : > { %v595_v40 = vmax.f32 %v495_v32, 0.0  ;;  %v611_v41 = vmax.f32 %v559_v33, 0.0 }
 0x111   : > { %v1010_v42 = vpack.c.bf16 %v597_v36, %v596_v34  ;;  %v1050_v43 = vpack.c.bf16 %v613_v37, %v612_v35 }
 0x112   : > { %v1005_v44 = vpack.c.bf16 %v595_v40, %v594_v38  ;;  %v1045_v45 = vpack.c.bf16 %v611_v41, %v610_v39  ;;  %v1131_v46 = vpop.f32.mrb[12].mxu0  ;;  %v1147_v47 = vpop.f32.mrb[12].mxu1 }
 0x113   : > { %1066 = vst [vmem:[%s1343_s17 + $0x28] sm:$0xff] %v1010_v42   ;;  %1074 = vst [vmem:[%s1343_s17 + $0x68] sm:$0xff] %v1050_v43   ;;  %v516_v48 = vadd.f32 %v1131_v46, %v1328_v24  ;;  %v580_v49 = vadd.f32 %v1147_v47, %v1328_v24  ;;  %v507_v50 = vpop.f32.mrb[13].mxu0  ;;  %v571_v51 = vpop.f32.mrb[13].mxu1 }
 0x114   : > { %1065 = vst [vmem:[%s1343_s17 + $0x20] sm:$0xff] %v1005_v44   ;;  %1073 = vst [vmem:[%s1343_s17 + $0x60] sm:$0xff] %v1045_v45   ;;  %v508_v52 = vadd.f32 %v1328_v24, %v507_v50  ;;  %v572_v53 = vadd.f32 %v1328_v24, %v571_v51  ;;  %v1132_v54 = vpop.f32.mrb[14].mxu0  ;;  %v1148_v55 = vpop.f32.mrb[14].mxu1 }
 0x115   : > { %v519_v56 = vadd.f32 %v1132_v54, %v1328_v24  ;;  %v583_v57 = vadd.f32 %v1148_v55, %v1328_v24  ;;  %v510_v58 = vpop.f32.mrb[15].mxu0  ;;  %v574_v59 = vpop.f32.mrb[15].mxu1  ;;  %v600_v62 = vmax.f32 %v516_v48, 0.0  ;;  %v616_v63 = vmax.f32 %v580_v49, 0.0 }
 0x116   : > { %v511_v60 = vadd.f32 %v1328_v24, %v510_v58  ;;  %v575_v61 = vadd.f32 %v1328_v24, %v574_v59  ;;  %v598_v2 = vmax.f32 %v508_v52, 0.0  ;;  %v614_v3 = vmax.f32 %v572_v53, 0.0 }
 0x117   : > { %v601_v0 = vmax.f32 %v519_v56, 0.0  ;;  %v617_v1 = vmax.f32 %v583_v57, 0.0 }
 0x118   : > { %v599_v4 = vmax.f32 %v511_v60, 0.0  ;;  %v615_v5 = vmax.f32 %v575_v61, 0.0 }
 0x119   : > { %v1020_v6 = vpack.c.bf16 %v601_v0, %v600_v62  ;;  %v1060_v7 = vpack.c.bf16 %v617_v1, %v616_v63 }
 0x11a   : > { %v1015_v8 = vpack.c.bf16 %v599_v4, %v598_v2  ;;  %v1055_v9 = vpack.c.bf16 %v615_v5, %v614_v3 }
 0x11b   : > { %1068 = vst [vmem:[%s1343_s17 + $0x38] sm:$0xff] %v1020_v6   ;;  %1076 = vst [vmem:[%s1343_s17 + $0x78] sm:$0xff] %v1060_v7  }
 0x11c   : > { %1067 = vst [vmem:[%s1343_s17 + $0x30] sm:$0xff] %v1015_v8   ;;  %1075 = vst [vmem:[%s1343_s17 + $0x70] sm:$0xff] %v1055_v9  }
 0x11d PF: > { %s13_s14 = sadd.s32 1, %s1235_s14   ;;  %s1398_s12 = smov %s1231_s13 }
 0x11e   : > { %p10_p5 = scmp.ge.s32.totalorder %s13_s14, 4   ;;  %s1399_s13 = smov %s1401_s15 }
 0x120   :  { %12 = sbr.rel (!%p10_p5) target bundleno = 2 (0x2), region = 68 }

// kernel: _forward.8
= control target key start
LH: loop header
LB: loop body
LE: loop exit
PB: predicated region body
PF: predicated region fallthrough
CT: control target
= control target key end

     0   :  { %s618_s1 = inlined_call_operand.vmem [shape: bf16[128,128], index: 1, kind: input, shape index: {}]   ;;  %s619_s0 = inlined_call_operand.vmem [shape: bf16[128,128], index: 0, kind: input, shape index: {}]   ;;  %s620_s2 = inlined_call_operand.vmem [shape: f32[1,128], index: 2, kind: input, shape index: {}]   ;;  %s621_s3 = inlined_call_operand.vmem [shape: bf16[128,128], index: 3, kind: output, shape index: {}]  }
   0x1   :  { %v507_v0 = vld [vmem:[%s618_s1] sm:$0xff]   ;;  %v508_v1 = vld [vmem:[%s618_s1 + $0x8] sm:$0xff]   ;;  %v509_v2 = vld [vmem:[%s618_s1 + $0x10] sm:$0xff]  }
   0x2   :  { %459 = vmatprep.subr.bf16.mxu0 %v507_v0  ;;  %491 = vmatprep.subr.bf16.mxu1 %v507_v0  ;;  %v510_v3 = vld [vmem:[%s618_s1 + $0x18] sm:$0xff]   ;;  %v515_v4 = vld [vmem:[%s619_s0] sm:$0xff]   ;;  %v512_v7 = vld [vmem:[%s618_s1 + $0x28] sm:$0xff]  }
   0x3   :  { %460 = vmatpush3.bf16.msra.mxu0 %v507_v0  ;;  %499 = vmatpush3.bf16.msra.mxu1 %v507_v0  ;;  %v516_v5 = vld [vmem:[%s619_s0 + $0x20] sm:$0xff]   ;;  %v513_v8 = vld [vmem:[%s618_s1 + $0x30] sm:$0xff]   ;;  %v514_v9 = vld [vmem:[%s618_s1 + $0x38] sm:$0xff]  }
   0x4   :  { %461 = vmatprep.subr.bf16.mxu0 %v508_v1  ;;  %492 = vmatprep.subr.bf16.mxu1 %v508_v1  ;;  %v511_v6 = vld [vmem:[%s618_s1 + $0x20] sm:$0xff]   ;;  %v517_v10 = vld [vmem:[%s619_s0 + $0x8] sm:$0xff]   ;;  %v519_v12 = vld [vmem:[%s619_s0 + $0x10] sm:$0xff]  }
   0x5   :  { %475 = vmatprep.mubr.bf16.mxu0 %v515_v4  ;;  %483 = vmatprep.mubr.bf16.mxu1 %v516_v5  ;;  %v518_v11 = vld [vmem:[%s619_s0 + $0x28] sm:$0xff]   ;;  %v520_v13 = vld [vmem:[%s619_s0 + $0x30] sm:$0xff]   ;;  %v521_v14 = vld [vmem:[%s619_s0 + $0x18] sm:$0xff]  }
   0x6   :  { %v522_v15 = vld [vmem:[%s619_s0 + $0x38] sm:$0xff]   ;;  %v347_v16 = vld [vmem:[%s620_s2] ss:$0 sm:$0xff] }
   0x7   :  { %462 = vmatpush3.bf16.msra.mxu0 %v508_v1  ;;  %500 = vmatpush3.bf16.msra.mxu1 %v508_v1 }
   0x8   :  { %463 = vmatprep.subr.bf16.mxu0 %v509_v2  ;;  %493 = vmatprep.subr.bf16.mxu1 %v509_v2 }
   0xb   :  { %464 = vmatpush3.bf16.msra.mxu0 %v509_v2  ;;  %501 = vmatpush3.bf16.msra.mxu1 %v509_v2 }
   0xc   :  { %465 = vmatprep.subr.bf16.mxu0 %v510_v3  ;;  %494 = vmatprep.subr.bf16.mxu1 %v510_v3 }
   0xf   :  { %466 = vmatpush3.bf16.msra.mxu0 %v510_v3  ;;  %502 = vmatpush3.bf16.msra.mxu1 %v510_v3 }
  0x10   :  { %467 = vmatprep.subr.bf16.mxu0 %v511_v6  ;;  %495 = vmatprep.subr.bf16.mxu1 %v511_v6 }
  0x13   :  { %468 = vmatpush3.bf16.msra.mxu0 %v511_v6  ;;  %503 = vmatpush3.bf16.msra.mxu1 %v511_v6 }
  0x14   :  { %469 = vmatprep.subr.bf16.mxu0 %v512_v7  ;;  %496 = vmatprep.subr.bf16.mxu1 %v512_v7 }
  0x17   :  { %470 = vmatpush3.bf16.msra.mxu0 %v512_v7  ;;  %504 = vmatpush3.bf16.msra.mxu1 %v512_v7 }
  0x18   :  { %471 = vmatprep.subr.bf16.mxu0 %v513_v8  ;;  %497 = vmatprep.subr.bf16.mxu1 %v513_v8 }
  0x1b   :  { %472 = vmatpush3.bf16.msra.mxu0 %v513_v8  ;;  %505 = vmatpush3.bf16.msra.mxu1 %v513_v8 }
  0x1c   :  { %473 = vmatprep.subr.bf16.mxu0 %v514_v9  ;;  %498 = vmatprep.subr.bf16.mxu1 %v514_v9 }
  0x1f   :  { %474 = vmatpush3.bf16.msra.mxu0 %v514_v9  ;;  %506 = vmatpush3.bf16.msra.mxu1 %v514_v9 }
  0x22   :  { %476 = vmatmul.mubr.bf16.vlgmr.msra.gmra.mrb[0].mxu0 %v517_v10  ;;  %484 = vmatmul.mubr.bf16.vlgmr.msra.gmra.mrb[0].mxu1 %v518_v11 }
  0x23   :  { %479 = vmatprep.mubr.bf16.mxu0 %v519_v12  ;;  %487 = vmatprep.mubr.bf16.mxu1 %v520_v13 }
  0x2a   :  { %480 = vmatmul.mubr.bf16.gmra.mrb[4].mxu0 %v521_v14  ;;  %488 = vmatmul.mubr.bf16.gmra.mrb[4].mxu1 %v522_v15 }
  0xf5   :  { %v477_v17 = vpop.f32.mrb[0].mxu0  ;;  %v485_v18 = vpop.f32.mrb[0].mxu1 }
  0xf6   :  { %v193_v19 = vadd.f32 %v477_v17, %v347_v16  ;;  %v225_v20 = vadd.f32 %v485_v18, %v347_v16  ;;  %v184_v21 = vpop.f32.mrb[1].mxu0  ;;  %v216_v22 = vpop.f32.mrb[1].mxu1 }
  0xf7   :  { %v185_v23 = vadd.f32 %v347_v16, %v184_v21  ;;  %v217_v24 = vadd.f32 %v347_v16, %v216_v22  ;;  %v478_v25 = vpop.f32.mrb[2].mxu0  ;;  %v486_v26 = vpop.f32.mrb[2].mxu1 }
  0xf8   :  { %v196_v27 = vadd.f32 %v478_v25, %v347_v16  ;;  %v228_v28 = vadd.f32 %v486_v26, %v347_v16  ;;  %v187_v29 = vpop.f32.mrb[3].mxu0  ;;  %v219_v30 = vpop.f32.mrb[3].mxu1  ;;  %v249_v33 = vmax.f32 %v193_v19, 0.0  ;;  %v257_v34 = vmax.f32 %v225_v20, 0.0 }
  0xf9   :  { %v188_v31 = vadd.f32 %v347_v16, %v187_v29  ;;  %v220_v32 = vadd.f32 %v347_v16, %v219_v30  ;;  %v247_v37 = vmax.f32 %v185_v23, 0.0  ;;  %v255_v38 = vmax.f32 %v217_v24, 0.0 }
  0xfa   :  { %v250_v35 = vmax.f32 %v196_v27, 0.0  ;;  %v258_v36 = vmax.f32 %v228_v28, 0.0 }
  0xfb   :  { %v248_v39 = vmax.f32 %v188_v31, 0.0  ;;  %v256_v40 = vmax.f32 %v220_v32, 0.0 }
  0xfc   :  { %v404_v41 = vpack.c.bf16 %v250_v35, %v249_v33  ;;  %v424_v42 = vpack.c.bf16 %v258_v36, %v257_v34 }
  0xfd   :  { %v399_v43 = vpack.c.bf16 %v248_v39, %v247_v37  ;;  %v419_v44 = vpack.c.bf16 %v256_v40, %v255_v38  ;;  %v481_v45 = vpop.f32.mrb[4].mxu0  ;;  %v489_v46 = vpop.f32.mrb[4].mxu1 }
  0xfe   :  { %436 = vst [vmem:[%s621_s3 + $0x8] sm:$0xff] %v404_v41   ;;  %440 = vst [vmem:[%s621_s3 + $0x28] sm:$0xff] %v424_v42   ;;  %v209_v47 = vadd.f32 %v481_v45, %v347_v16  ;;  %v241_v48 = vadd.f32 %v489_v46, %v347_v16  ;;  %v200_v49 = vpop.f32.mrb[5].mxu0  ;;  %v232_v50 = vpop.f32.mrb[5].mxu1 }
  0xff   :  { %400 = vst [vmem:[%s621_s3] sm:$0xff] %v399_v43   ;;  %439 = vst [vmem:[%s621_s3 + $0x20] sm:$0xff] %v419_v44   ;;  %v201_v51 = vadd.f32 %v347_v16, %v200_v49  ;;  %v233_v52 = vadd.f32 %v347_v16, %v232_v50  ;;  %v482_v53 = vpop.f32.mrb[6].mxu0  ;;  %v490_v54 = vpop.f32.mrb[6].mxu1 }
 0x100   :  { %v212_v55 = vadd.f32 %v482_v53, %v347_v16  ;;  %v244_v56 = vadd.f32 %v490_v54, %v347_v16  ;;  %v203_v57 = vpop.f32.mrb[7].mxu0  ;;  %v235_v58 = vpop.f32.mrb[7].mxu1  ;;  %v253_v61 = vmax.f32 %v209_v47, 0.0  ;;  %v261_v62 = vmax.f32 %v241_v48, 0.0 }
 0x101   :  { %v204_v59 = vadd.f32 %v347_v16, %v203_v57  ;;  %v236_v60 = vadd.f32 %v347_v16, %v235_v58  ;;  %v251_v1 = vmax.f32 %v201_v51, 0.0  ;;  %v259_v2 = vmax.f32 %v233_v52, 0.0 }
 0x102   :  { %v254_v63 = vmax.f32 %v212_v55, 0.0  ;;  %v262_v0 = vmax.f32 %v244_v56, 0.0 }
 0x103   :  { %v252_v3 = vmax.f32 %v204_v59, 0.0  ;;  %v260_v4 = vmax.f32 %v236_v60, 0.0 }
 0x104   :  { %v414_v5 = vpack.c.bf16 %v254_v63, %v253_v61  ;;  %v434_v6 = vpack.c.bf16 %v262_v0, %v261_v62 }
 0x105   :  { %v409_v7 = vpack.c.bf16 %v252_v3, %v251_v1  ;;  %v429_v8 = vpack.c.bf16 %v260_v4, %v259_v2 }
 0x106   :  { %438 = vst [vmem:[%s621_s3 + $0x18] sm:$0xff] %v414_v5   ;;  %442 = vst [vmem:[%s621_s3 + $0x38] sm:$0xff] %v434_v6  }
 0x107   :  { %437 = vst [vmem:[%s621_s3 + $0x10] sm:$0xff] %v409_v7   ;;  %441 = vst [vmem:[%s621_s3 + $0x30] sm:$0xff] %v429_v8  }

// kernel: _forward.11
= control target key start
LH: loop header
LB: loop body
LE: loop exit
PB: predicated region body
PF: predicated region fallthrough
CT: control target
= control target key end

     0   :  { %s368_s1 = inlined_call_operand.vmem [shape: bf16[256,128], index: 1, kind: input, shape index: {}]   ;;  %s369_s0 = inlined_call_operand.vmem [shape: bf16[16,256], index: 0, kind: input, shape index: {}]   ;;  %s370_s2 = inlined_call_operand.vmem [shape: f32[1,128], index: 2, kind: input, shape index: {}]   ;;  %s371_s3 = inlined_call_operand.vmem [shape: bf16[16,128], index: 3, kind: output, shape index: {}]  }
   0x1   :  { %v269_v0 = vld [vmem:[%s368_s1 + $0x40] sm:$0xff]   ;;  %v271_v2 = vld [vmem:[%s368_s1 + $0x48] sm:$0xff]   ;;  %v273_v4 = vld [vmem:[%s368_s1 + $0x50] sm:$0xff]  }
   0x2   :  { %v270_v1 = vld [vmem:[%s368_s1] sm:$0xff]   ;;  %247 = vmatprep.subr.bf16.mxu0 %v269_v0  ;;  %v272_v3 = vld [vmem:[%s368_s1 + $0x8] sm:$0xff]   ;;  %v274_v5 = vld [vmem:[%s368_s1 + $0x10] sm:$0xff]  }
   0x3   :  { %248 = vmatpush3.bf16.msra.mxu0 %v270_v1  ;;  %v275_v6 = vld [vmem:[%s368_s1 + $0x58] sm:$0xff]   ;;  %v277_v8 = vld [vmem:[%s368_s1 + $0x60] sm:$0xff]   ;;  %v279_v10 = vld [vmem:[%s368_s1 + $0x68] sm:$0xff]  }
   0x4   :  { %249 = vmatprep.subr.bf16.mxu0 %v271_v2  ;;  %v276_v7 = vld [vmem:[%s368_s1 + $0x18] sm:$0xff]   ;;  %v278_v9 = vld [vmem:[%s368_s1 + $0x20] sm:$0xff]   ;;  %v280_v12 = vld [vmem:[%s368_s1 + $0x28] sm:$0xff]  }
   0x5   :  { %v287_v11 = vld [vmem:[%s369_s0 + $0x4] ss:$8 sps:$4 sm:$0xff]   ;;  %v281_v13 = vld [vmem:[%s368_s1 + $0x70] sm:$0xff]   ;;  %v283_v15 = vld [vmem:[%s368_s1 + $0x78] sm:$0xff]  }
   0x6   :  { %194 = vmatprep.mubr.bf16.mxu0 %v287_v11  ;;  %v282_v14 = vld [vmem:[%s368_s1 + $0x30] sm:$0xff]   ;;  %v284_v16 = vld [vmem:[%s368_s1 + $0x38] sm:$0xff]   ;;  %v285_v17 = vld [vmem:[%s369_s0] ss:$8 sps:$4 sm:$0xff]  }
   0x7   :  { %250 = vmatpush3.bf16.msra.mxu0 %v272_v3  ;;  %v219_v19 = vld [vmem:[%s370_s2] ss:$0 sm:$0xff] }
   0x8   :  { %251 = vmatprep.subr.bf16.mxu0 %v273_v4 }
   0xb   :  { %252 = vmatpush3.bf16.msra.mxu0 %v274_v5 }
   0xc   :  { %253 = vmatprep.subr.bf16.mxu0 %v275_v6 }
   0xf   :  { %254 = vmatpush3.bf16.msra.mxu0 %v276_v7 }
  0x10   :  { %255 = vmatprep.subr.bf16.mxu0 %v277_v8 }
  0x13   :  { %256 = vmatpush3.bf16.msra.mxu0 %v278_v9 }
  0x14   :  { %257 = vmatprep.subr.bf16.mxu0 %v279_v10 }
  0x17   :  { %258 = vmatpush3.bf16.msra.mxu0 %v280_v12 }
  0x18   :  { %259 = vmatprep.subr.bf16.mxu0 %v281_v13 }
  0x1b   :  { %260 = vmatpush3.bf16.msra.mxu0 %v282_v14 }
  0x1c   :  { %261 = vmatprep.subr.bf16.mxu0 %v283_v15 }
  0x1f   :  { %262 = vmatpush3.bf16.msra.mxu0 %v284_v16 }
  0x22   :  { %195 = vmatmul.mubr.bf16.vlgmr.msra.gmra.mrb[0].mxu0 %v285_v17 }
  0xf5   :  { %v263_v18 = vpop.f32.mrb[0].mxu0 }
  0xf6   :  { %v264_v20 = vpop.f32.mrb[1].mxu0 }
  0xf7   :  { %v265_v21 = vadd.f32 %v264_v20, %v263_v18  ;;  %v266_v22 = vpop.f32.mrb[2].mxu0 }
  0xf8   :  { %v267_v23 = vpop.f32.mrb[3].mxu0 }
  0xf9   :  { %v197_v24 = vadd.f32 %v265_v21, %v219_v19  ;;  %v268_v25 = vadd.f32 %v267_v23, %v266_v22 }
  0xfb   :  { %v200_v26 = vadd.f32 %v268_v25, %v219_v19  ;;  %v203_v27 = vmax.f32 %v197_v24, 0.0 }
  0xfd   :  { %v204_v28 = vmax.f32 %v200_v26, 0.0 }
  0xff   :  { %v245_v29 = vpack.c.bf16 %v204_v28, %v203_v27 }
 0x101   :  { %246 = vst [vmem:[%s371_s3] sm:$0xff] %v245_v29  }

// kernel: _forward.10
= control target key start
LH: loop header
LB: loop body
LE: loop exit
PB: predicated region body
PF: predicated region fallthrough
CT: control target
= control target key end

     0   :  { %s446_s1 = inlined_call_operand.vmem [shape: bf16[256,128], index: 1, kind: input, shape index: {}]   ;;  %s447_s0 = inlined_call_operand.vmem [shape: bf16[32,256], index: 0, kind: input, shape index: {}]   ;;  %s448_s2 = inlined_call_operand.vmem [shape: f32[1,128], index: 2, kind: input, shape index: {}]   ;;  %s449_s3 = inlined_call_operand.vmem [shape: bf16[32,128], index: 3, kind: output, shape index: {}]  }
   0x1   :  { %v335_v0 = vld [vmem:[%s446_s1 + $0x40] sm:$0xff]   ;;  %v337_v2 = vld [vmem:[%s446_s1 + $0x48] sm:$0xff]   ;;  %v339_v4 = vld [vmem:[%s446_s1 + $0x50] sm:$0xff]  }
   0x2   :  { %v336_v1 = vld [vmem:[%s446_s1] sm:$0xff]   ;;  %291 = vmatprep.subr.bf16.mxu0 %v335_v0  ;;  %319 = vmatprep.subr.bf16.mxu1 %v335_v0  ;;  %v338_v3 = vld [vmem:[%s446_s1 + $0x8] sm:$0xff]   ;;  %v340_v5 = vld [vmem:[%s446_s1 + $0x10] sm:$0xff]  }
   0x3   :  { %292 = vmatpush3.bf16.msra.mxu0 %v336_v1  ;;  %327 = vmatpush3.bf16.msra.mxu1 %v336_v1  ;;  %v341_v6 = vld [vmem:[%s446_s1 + $0x58] sm:$0xff]   ;;  %v343_v8 = vld [vmem:[%s446_s1 + $0x60] sm:$0xff]   ;;  %v345_v10 = vld [vmem:[%s446_s1 + $0x68] sm:$0xff]  }
   0x4   :  { %293 = vmatprep.subr.bf16.mxu0 %v337_v2  ;;  %320 = vmatprep.subr.bf16.mxu1 %v337_v2  ;;  %v342_v7 = vld [vmem:[%s446_s1 + $0x18] sm:$0xff]   ;;  %v344_v9 = vld [vmem:[%s446_s1 + $0x20] sm:$0xff]   ;;  %v346_v13 = vld [vmem:[%s446_s1 + $0x28] sm:$0xff]  }
   0x5   :  { %v353_v11 = vld [vmem:[%s447_s0 + $0x4] ss:$8 sps:$4 sm:$0xff]   ;;  %v356_v12 = vld [vmem:[%s447_s0 + $0x14] ss:$8 sps:$4 sm:$0xff]   ;;  %v351_v18 = vld [vmem:[%s447_s0] ss:$8 sps:$4 sm:$0xff]  }
   0x6   :  { %v347_v14 = vld [vmem:[%s446_s1 + $0x70] sm:$0xff]   ;;  %206 = vmatprep.mubr.bf16.mxu0 %v353_v11  ;;  %214 = vmatprep.mubr.bf16.mxu1 %v356_v12  ;;  %v349_v16 = vld [vmem:[%s446_s1 + $0x78] sm:$0xff]   ;;  %v251_v22 = vld [vmem:[%s448_s2] ss:$0 sm:$0xff] }
   0x7   :  { %294 = vmatpush3.bf16.msra.mxu0 %v338_v3  ;;  %328 = vmatpush3.bf16.msra.mxu1 %v338_v3  ;;  %v348_v15 = vld [vmem:[%s446_s1 + $0x30] sm:$0xff]   ;;  %v350_v17 = vld [vmem:[%s446_s1 + $0x38] sm:$0xff]  }
   0x8   :  { %295 = vmatprep.subr.bf16.mxu0 %v339_v4  ;;  %321 = vmatprep.subr.bf16.mxu1 %v339_v4  ;;  %v354_v19 = vld [vmem:[%s447_s0 + $0x10] ss:$8 sps:$4 sm:$0xff]  }
   0xb   :  { %296 = vmatpush3.bf16.msra.mxu0 %v340_v5  ;;  %329 = vmatpush3.bf16.msra.mxu1 %v340_v5 }
   0xc   :  { %297 = vmatprep.subr.bf16.mxu0 %v341_v6  ;;  %322 = vmatprep.subr.bf16.mxu1 %v341_v6 }
   0xf   :  { %298 = vmatpush3.bf16.msra.mxu0 %v342_v7  ;;  %330 = vmatpush3.bf16.msra.mxu1 %v342_v7 }
  0x10   :  { %299 = vmatprep.subr.bf16.mxu0 %v343_v8  ;;  %323 = vmatprep.subr.bf16.mxu1 %v343_v8 }
  0x13   :  { %300 = vmatpush3.bf16.msra.mxu0 %v344_v9  ;;  %331 = vmatpush3.bf16.msra.mxu1 %v344_v9 }
  0x14   :  { %301 = vmatprep.subr.bf16.mxu0 %v345_v10  ;;  %324 = vmatprep.subr.bf16.mxu1 %v345_v10 }
  0x17   :  { %302 = vmatpush3.bf16.msra.mxu0 %v346_v13  ;;  %332 = vmatpush3.bf16.msra.mxu1 %v346_v13 }
  0x18   :  { %303 = vmatprep.subr.bf16.mxu0 %v347_v14  ;;  %325 = vmatprep.subr.bf16.mxu1 %v347_v14 }
  0x1b   :  { %304 = vmatpush3.bf16.msra.mxu0 %v348_v15  ;;  %333 = vmatpush3.bf16.msra.mxu1 %v348_v15 }
  0x1c   :  { %305 = vmatprep.subr.bf16.mxu0 %v349_v16  ;;  %326 = vmatprep.subr.bf16.mxu1 %v349_v16 }
  0x1f   :  { %306 = vmatpush3.bf16.msra.mxu0 %v350_v17  ;;  %334 = vmatpush3.bf16.msra.mxu1 %v350_v17 }
  0x22   :  { %207 = vmatmul.mubr.bf16.vlgmr.msra.gmra.mrb[0].mxu0 %v351_v18  ;;  %215 = vmatmul.mubr.bf16.vlgmr.msra.gmra.mrb[0].mxu1 %v354_v19 }
  0xf5   :  { %v307_v20 = vpop.f32.mrb[0].mxu0  ;;  %v313_v21 = vpop.f32.mrb[0].mxu1 }
  0xf6   :  { %v308_v23 = vpop.f32.mrb[1].mxu0  ;;  %v314_v24 = vpop.f32.mrb[1].mxu1 }
  0xf7   :  { %v309_v25 = vadd.f32 %v308_v23, %v307_v20  ;;  %v315_v26 = vadd.f32 %v314_v24, %v313_v21  ;;  %v310_v27 = vpop.f32.mrb[2].mxu0  ;;  %v316_v28 = vpop.f32.mrb[2].mxu1 }
  0xf8   :  { %v311_v29 = vpop.f32.mrb[3].mxu0  ;;  %v317_v30 = vpop.f32.mrb[3].mxu1 }
  0xf9   :  { %v209_v31 = vadd.f32 %v309_v25, %v251_v22  ;;  %v217_v32 = vadd.f32 %v315_v26, %v251_v22  ;;  %v312_v33 = vadd.f32 %v311_v29, %v310_v27  ;;  %v318_v34 = vadd.f32 %v317_v30, %v316_v28 }
  0xfb   :  { %v212_v35 = vadd.f32 %v312_v33, %v251_v22  ;;  %v220_v36 = vadd.f32 %v318_v34, %v251_v22  ;;  %v223_v37 = vmax.f32 %v209_v31, 0.0  ;;  %v225_v38 = vmax.f32 %v217_v32, 0.0 }
  0xfd   :  { %v224_v39 = vmax.f32 %v212_v35, 0.0  ;;  %v226_v40 = vmax.f32 %v220_v36, 0.0 }
  0xff   :  { %v283_v41 = vpack.c.bf16 %v224_v39, %v223_v37  ;;  %v288_v42 = vpack.c.bf16 %v226_v40, %v225_v38 }
 0x101   :  { %284 = vst [vmem:[%s449_s3] sm:$0xff] %v283_v41   ;;  %290 = vst [vmem:[%s449_s3 + $0x8] sm:$0xff] %v288_v42  }

// kernel: _forward.12
= control target key start
LH: loop header
LB: loop body
LE: loop exit
PB: predicated region body
PF: predicated region fallthrough
CT: control target
= control target key end

     0   :  { %v210_v0 = vmov 0.0   ;;  %vm211_vm0 = vmmov 0   ;;  %s265_s1 = inlined_call_operand.vmem [shape: bf16[128,128], index: 1, kind: input, shape index: {}]   ;;  %s266_s0 = inlined_call_operand.vmem [shape: bf16[16,128], index: 0, kind: input, shape index: {}]   ;;  %s267_s2 = inlined_call_operand.vmem [shape: f32[1,128], index: 2, kind: input, shape index: {}]   ;;  %s268_s3 = inlined_call_operand.vmem [shape: bf16[16,128], index: 3, kind: output, shape index: {}]  }
   0x1   :  { %179 = vmatprep.subr.bf16.mxu0 %v210_v0  ;;  %v201_v1 = vld [vmem:[%s265_s1] sm:$0xff]   ;;  %195 = vmatprep.mubr.msk.bf16.mxu0 %vm211_vm0, %v210_v0  ;;  %v202_v2 = vld [vmem:[%s265_s1 + $0x8] sm:$0xff]   ;;  %v203_v3 = vld [vmem:[%s265_s1 + $0x10] sm:$0xff]  }
   0x2   :  { %180 = vmatpush3.bf16.msra.mxu0 %v201_v1  ;;  %v204_v4 = vld [vmem:[%s265_s1 + $0x18] sm:$0xff]   ;;  %v205_v5 = vld [vmem:[%s265_s1 + $0x20] sm:$0xff]   ;;  %v206_v6 = vld [vmem:[%s265_s1 + $0x28] sm:$0xff]  }
   0x3   :  { %181 = vmatprep.subr.bf16.mxu0 %v210_v0  ;;  %v207_v7 = vld [vmem:[%s265_s1 + $0x30] sm:$0xff]   ;;  %v208_v8 = vld [vmem:[%s265_s1 + $0x38] sm:$0xff]   ;;  %v209_v9 = vld [vmem:[%s266_s0] sm:$0xff]  }
   0x4   :  { %v151_v10 = vld [vmem:[%s267_s2] ss:$0 sm:$0xff] }
   0x6   :  { %182 = vmatpush3.bf16.msra.mxu0 %v202_v2 }
   0x7   :  { %183 = vmatprep.subr.bf16.mxu0 %v210_v0 }
   0xa   :  { %184 = vmatpush3.bf16.msra.mxu0 %v203_v3 }
   0xb   :  { %185 = vmatprep.subr.bf16.mxu0 %v210_v0 }
   0xe   :  { %186 = vmatpush3.bf16.msra.mxu0 %v204_v4 }
   0xf   :  { %187 = vmatprep.subr.bf16.mxu0 %v210_v0 }
  0x12   :  { %188 = vmatpush3.bf16.msra.mxu0 %v205_v5 }
  0x13   :  { %189 = vmatprep.subr.bf16.mxu0 %v210_v0 }
  0x16   :  { %190 = vmatpush3.bf16.msra.mxu0 %v206_v6 }
  0x17   :  { %191 = vmatprep.subr.bf16.mxu0 %v210_v0 }
  0x1a   :  { %192 = vmatpush3.bf16.msra.mxu0 %v207_v7 }
  0x1b   :  { %193 = vmatprep.subr.bf16.mxu0 %v210_v0 }
  0x1e   :  { %194 = vmatpush3.bf16.msra.mxu0 %v208_v8 }
  0x21   :  { %196 = vmatmul.mubr.bf16.vlgmr.msra.gmra.mrb[0].mxu0 %v209_v9 }
  0xf4   :  { %v128_v11 = vpop.f32.mrb[0].mxu0 }
  0xf5   :  { %v129_v12 = vadd.f32 %v151_v10, %v128_v11  ;;  %v197_v13 = vpop.f32.mrb[1].mxu0 }
  0xf6   :  { %v131_v14 = vpop.f32.mrb[2].mxu0 }
  0xf7   :  { %v132_v15 = vadd.f32 %v151_v10, %v131_v14  ;;  %v198_v16 = vpop.f32.mrb[3].mxu0  ;;  %v135_v17 = vmax.f32 %v129_v12, 0.0 }
  0xf9   :  { %v136_v18 = vmax.f32 %v132_v15, 0.0 }
  0xfb   :  { %v168_v19 = vpack.c.bf16 %v136_v18, %v135_v17 }
  0xfd   :  { %169 = vst [vmem:[%s268_s3] sm:$0xff] %v168_v19  }

// kernel: _forward.13
= control target key start
LH: loop header
LB: loop body
LE: loop exit
PB: predicated region body
PF: predicated region fallthrough
CT: control target
= control target key end

     0   :  { %v191_v0 = vmov 0.0   ;;  %vm192_vm0 = vmmov 0   ;;  %s249_s1 = inlined_call_operand.vmem [shape: bf16[128,128], index: 1, kind: input, shape index: {}]   ;;  %s250_s0 = inlined_call_operand.vmem [shape: bf16[16,128], index: 0, kind: input, shape index: {}]   ;;  %s251_s2 = inlined_call_operand.vmem [shape: f32[1,128], index: 2, kind: input, shape index: {}]   ;;  %s252_s3 = inlined_call_operand.vmem [shape: f32[16,128], index: 3, kind: output, shape index: {}]  }
   0x1   :  { %160 = vmatprep.subr.bf16.mxu0 %v191_v0  ;;  %v182_v1 = vld [vmem:[%s249_s1] sm:$0xff]   ;;  %176 = vmatprep.mubr.msk.bf16.mxu0 %vm192_vm0, %v191_v0  ;;  %v183_v2 = vld [vmem:[%s249_s1 + $0x8] sm:$0xff]   ;;  %v184_v3 = vld [vmem:[%s249_s1 + $0x10] sm:$0xff]  }
   0x2   :  { %161 = vmatpush3.bf16.msra.mxu0 %v182_v1  ;;  %v185_v4 = vld [vmem:[%s249_s1 + $0x18] sm:$0xff]   ;;  %v186_v5 = vld [vmem:[%s249_s1 + $0x20] sm:$0xff]   ;;  %v187_v6 = vld [vmem:[%s249_s1 + $0x28] sm:$0xff]  }
   0x3   :  { %162 = vmatprep.subr.bf16.mxu0 %v191_v0  ;;  %v188_v7 = vld [vmem:[%s249_s1 + $0x30] sm:$0xff]   ;;  %v189_v8 = vld [vmem:[%s249_s1 + $0x38] sm:$0xff]   ;;  %v190_v9 = vld [vmem:[%s250_s0] sm:$0xff]  }
   0x4   :  { %v141_v10 = vld [vmem:[%s251_s2] ss:$0 sm:$0xff] }
   0x6   :  { %163 = vmatpush3.bf16.msra.mxu0 %v183_v2 }
   0x7   :  { %164 = vmatprep.subr.bf16.mxu0 %v191_v0 }
   0xa   :  { %165 = vmatpush3.bf16.msra.mxu0 %v184_v3 }
   0xb   :  { %166 = vmatprep.subr.bf16.mxu0 %v191_v0 }
   0xe   :  { %167 = vmatpush3.bf16.msra.mxu0 %v185_v4 }
   0xf   :  { %168 = vmatprep.subr.bf16.mxu0 %v191_v0 }
  0x12   :  { %169 = vmatpush3.bf16.msra.mxu0 %v186_v5 }
  0x13   :  { %170 = vmatprep.subr.bf16.mxu0 %v191_v0 }
  0x16   :  { %171 = vmatpush3.bf16.msra.mxu0 %v187_v6 }
  0x17   :  { %172 = vmatprep.subr.bf16.mxu0 %v191_v0 }
  0x1a   :  { %173 = vmatpush3.bf16.msra.mxu0 %v188_v7 }
  0x1b   :  { %174 = vmatprep.subr.bf16.mxu0 %v191_v0 }
  0x1e   :  { %175 = vmatpush3.bf16.msra.mxu0 %v189_v8 }
  0x21   :  { %177 = vmatmul.mubr.bf16.vlgmr.msra.gmra.mrb[0].mxu0 %v190_v9 }
  0xf4   :  { %v128_v11 = vpop.f32.mrb[0].mxu0 }
  0xf5   :  { %v129_v12 = vadd.f32 %v141_v10, %v128_v11  ;;  %v178_v13 = vpop.f32.mrb[1].mxu0 }
  0xf6   :  { %v131_v14 = vpop.f32.mrb[2].mxu0 }
  0xf7   :  { %135 = vst [vmem:[%s252_s3] sm:$0xff] %v129_v12  ;;  %v132_v15 = vadd.f32 %v141_v10, %v131_v14  ;;  %v179_v16 = vpop.f32.mrb[3].mxu0 }
  0xf9   :  { %136 = vst [vmem:[%s252_s3 + $0x8] sm:$0xff] %v132_v15 }

</bundles_post_ra>
